<compile_context>
chip_gen: v7x
topology: tpu7x:2x2x1
jax: 0.10.0
libtpu: 0.0.40
codegen_flags: <defaults>
</compile_context>

<pallas_src>
import functools
import math

import jax
import jax.numpy as jnp
from jax.experimental import pallas as pl
from jax.experimental.pallas import tpu as pltpu


def attention_kernel(q_ref, v_ref, wk_ref, wq_ref, bq_ref, wo_ref,
                     ctx_ref, att_ref, *, mxu_dtype=None):
    bt, s, _ = v_ref.shape
    h = wk_ref.shape[1]

    v = v_ref[...]                                        # [Bt, S, V] f32
    # Free relabel when S is a multiple of 8 (sublane aligned).
    # TODO(synk): pad S to a multiple of 8 (with score masking) for ragged S.
    v2d = v.reshape(bt * s, -1)                           # [Bt*S, V]

    if mxu_dtype is None:
        # Exact f32 MXU path (v5e-safe; tight match vs the f32 reference).
        keys = jnp.dot(v2d, wk_ref[...],
                       preferred_element_type=jnp.float32,
                       precision=jax.lax.Precision.HIGHEST)           # [Bt*S, H]
        qp = jnp.dot(q_ref[...], wq_ref[...],
                     preferred_element_type=jnp.float32,
                     precision=jax.lax.Precision.HIGHEST) + bq_ref[...]
    else:
        # v6e/v7x option: bf16 MXU operands, f32 accumulation.
        keys = jnp.dot(v2d.astype(mxu_dtype), wk_ref[...].astype(mxu_dtype),
                       preferred_element_type=jnp.float32)
        qp = jnp.dot(q_ref[...].astype(mxu_dtype), wq_ref[...].astype(mxu_dtype),
                     preferred_element_type=jnp.float32) + bq_ref[...]

    # tanh(query_proj.unsqueeze(1) + keys) -- f32 on the VPU/EUP (v5e-safe).
    hidden = jnp.tanh(keys.reshape(bt, s, h) + qp[:, None, :])        # [Bt, S, H]

    # hidden_to_out_proj: VPU mul + cross-lane reduce (out-proj bias is a
    # constant shift of every score, so it cancels in the softmax below).
    scores = jnp.sum(hidden * wo_ref[...], axis=-1)                   # [Bt, S]

    # Softmax over the sequence axis; exact normalization (approx reciprocal
    # was not accurate enough for the 1e-4 check / exactly-normalized rows).
    m = jnp.max(scores, axis=-1, keepdims=True)
    e = jnp.exp(scores - m)
    att = e / jnp.sum(e, axis=-1, keepdims=True)                      # [Bt, S]

    # context = sum_s att[b,s] * value[b,s,:]  -- VPU broadcast multiply +
    # sublane reduce instead of Bt tiny M=1 MXU matmuls.
    ctx_ref[...] = jnp.sum(att[:, :, None] * v, axis=1)               # [Bt, V]
    att_ref[...] = att                                                # [Bt, S]


def _round_up(x, m):
    return ((x + m - 1) // m) * m


def _choose_block_b(B, S, V, Q, H, *, vmem_budget_bytes,
                    target_value_bytes=2 * 1024 * 1024):
    """Largest batch tile (multiple of 8) whose working set fits the VMEM budget."""
    f32 = 4

    def footprint(bt):
        weights = 2 * (V * H + Q * H + 2 * H) * f32          # double-buffered weights
        io = 2 * bt * (S * V + Q + V + S) * f32              # double-buffered in/out blocks
        interm = bt * S * (4 * H + 2 * V) * f32              # keys/hidden/exp/ctx temps
        return weights + io + interm

    # Keep >= 2 grid blocks when B allows so v7x's two TensorCores both get
    # work under dimension_semantics=("parallel",).
    cap = _round_up(max(8, math.ceil(B / 2)), 8) if B > 8 else 8
    bt = 8
    while bt < cap and footprint(min(2 * bt, cap)) <= vmem_budget_bytes:
        bt = min(2 * bt, cap)
        if bt * S * V * f32 >= target_value_bytes:
            break
    return bt


def attention_forward(query, value, params, *, block_b=None,
                      vmem_budget_bytes=48 * 1024 * 1024, mxu_dtype=None):
    """query: [B, Q], value: [B, S, V] -> (context [B, V], att_weights [B, S])."""
    B, S, V = value.shape
    Q = query.shape[1]
    H = params["wk"].shape[0]

    if block_b is None:
        block_b = _choose_block_b(B, S, V, Q, H,
                                  vmem_budget_bytes=vmem_budget_bytes)
    bt = max(8, min(_round_up(block_b, 8), _round_up(B, 8)))
    n_blocks = (B + bt - 1) // bt
    Bp = n_blocks * bt
    if Bp != B:
        # Zero-padded rows are benign (finite uniform softmax, zero context)
        # and are sliced off below.
        query = jnp.pad(query, ((0, Bp - B), (0, 0)))
        value = jnp.pad(value, ((0, Bp - B), (0, 0), (0, 0)))

    # Pre-transpose Linear weights ([out, in] -> [in, out]); the out-proj
    # weight stays a [1, H] row for the VPU reduce.
    wk_t = params["wk"].T                   # [V, H]
    wq_t = params["wq"].T                   # [Q, H]
    bq = params["bq"].reshape(1, H)         # [1, H]
    wo = params["wo"].reshape(1, H)         # [1, H]

    kernel = functools.partial(attention_kernel, mxu_dtype=mxu_dtype)

    ctx, att = pl.pallas_call(
        kernel,
        out_shape=(
            jax.ShapeDtypeStruct((Bp, V), jnp.float32),
            jax.ShapeDtypeStruct((Bp, S), jnp.float32),
        ),
        grid=(n_blocks,),
        in_specs=[
            pl.BlockSpec((bt, Q), lambda b: (b, 0)),          # query
            pl.BlockSpec((bt, S, V), lambda b: (b, 0, 0)),    # value
            pl.BlockSpec((V, H), lambda b: (0, 0)),           # Wk^T (VMEM-resident)
            pl.BlockSpec((Q, H), lambda b: (0, 0)),           # Wq^T (VMEM-resident)
            pl.BlockSpec((1, H), lambda b: (0, 0)),           # query_proj bias
            pl.BlockSpec((1, H), lambda b: (0, 0)),           # out-proj weight row
        ],
        out_specs=(
            pl.BlockSpec((bt, V), lambda b: (b, 0)),          # contxt_vec
            pl.BlockSpec((bt, S), lambda b: (b, 0)),          # att_weights
        ),
        compiler_params=pltpu.CompilerParams(
            # Batch axis is independent -> megacore-shardable (2 TCs on v7x).
            dimension_semantics=("parallel",),
            # Matches the tiling budget; fits v7x's 64 MiB physical VMEM and
            # raises the 16/32 MiB scoped defaults on v5e/v6e.
            vmem_limit_bytes=vmem_budget_bytes,
        ),
    )(query, value, wk_t, wq_t, bq, wo)

    return ctx[:B], att[:B]


def reference_forward(query, value, p):
    hp = jax.lax.Precision.HIGHEST
    keys = jnp.einsum("bsv,hv->bsh", value, p["wk"], precision=hp)     # [B, S, H]
    qp = jnp.dot(query, p["wq"].T, precision=hp) + p["bq"]             # [B, H]
    hidden = jnp.tanh(qp[:, None, :] + keys)                           # [B, S, H]
    scores = jnp.einsum("bsh,oh->bso", hidden, p["wo"], precision=hp) + p["bo"]
    att = jax.nn.softmax(scores, axis=1)                               # [B, S, 1]
    ctx = (value * att).sum(axis=1)                                    # [B, V]
    return ctx, att[..., 0]


def init_params(key, query_dim, value_dim, hidden_dim):
    # PyTorch Linear default init: U(-1/sqrt(fan_in), 1/sqrt(fan_in)).
    k1, k2, k3, k4, k5 = jax.random.split(key, 5)

    def unif(k, shape, fan_in):
        bound = 1.0 / jnp.sqrt(fan_in)
        return jax.random.uniform(k, shape, jnp.float32, -bound, bound)

    return {
        "wk": unif(k1, (hidden_dim, value_dim), value_dim),   # keys_lin_proj.weight
        "wq": unif(k2, (hidden_dim, query_dim), query_dim),   # query_proj.weight
        "bq": unif(k3, (hidden_dim,), query_dim),             # query_proj.bias
        "wo": unif(k4, (1, hidden_dim), hidden_dim),          # hidden_to_out_proj.weight
        "bo": unif(k5, (1,), hidden_dim),                     # hidden_to_out_proj.bias
    }


if __name__ == "__main__":
    B, S = 16, 8                     # B=16 -> 2 grid blocks of 8 rows each
    QUERY_DIM, VALUE_DIM, HIDDEN_DIM = 32, 32, 32

    key = jax.random.PRNGKey(0)
    kq, kv, kp = jax.random.split(key, 3)

    query = jax.random.normal(kq, (B, QUERY_DIM), jnp.float32)
    value = jax.random.normal(kv, (B, S, VALUE_DIM), jnp.float32)
    params = init_params(kp, QUERY_DIM, VALUE_DIM, HIDDEN_DIM)

    ctx, att = attention_forward(query, value, params)
    jax.block_until_ready((ctx, att))

    ctx_ref, att_ref = reference_forward(query, value, params)
    assert ctx.shape == (B, VALUE_DIM) and att.shape == (B, S)
    assert jnp.allclose(ctx, ctx_ref, atol=1e-4, rtol=1e-4)
    assert jnp.allclose(att, att_ref, atol=1e-4, rtol=1e-4)
    # Attention rows are exactly normalized (exact softmax divide).
    assert jnp.allclose(att.sum(-1), jnp.ones((B,)), atol=1e-5)

    print("KERNEL_OK")
</pallas_src>

<mosaic_0001>
module attributes {stable_mosaic.version = 11 : i64} {
  func.func @attention_kernel(%arg0: i32, %arg1: memref<8x32xf32, #tpu.memory_space<vmem>>, %arg2: memref<8x8x32xf32, #tpu.memory_space<vmem>>, %arg3: memref<32x32xf32, #tpu.memory_space<vmem>>, %arg4: memref<32x32xf32, #tpu.memory_space<vmem>>, %arg5: memref<1x32xf32, #tpu.memory_space<vmem>>, %arg6: memref<1x32xf32, #tpu.memory_space<vmem>>, %arg7: memref<8x32xf32, #tpu.memory_space<vmem>>, %arg8: memref<8x8xf32, #tpu.memory_space<vmem>>) attributes {dimension_semantics = [#tpu.dimension_semantics<parallel>], iteration_bounds = array<i64: 2>, scalar_prefetch = 0 : i64, scratch_operands = 0 : i64, tpu.core_type = #tpu.core_type<tc>, window_params = [{transform_indices = @transform_0, window_bounds = array<i64: 8, 32>}, {transform_indices = @transform_1, window_bounds = array<i64: 8, 8, 32>}, {pipeline_mode = #tpu.pipeline_mode<synchronous>, transform_indices = @transform_2, window_bounds = array<i64: 32, 32>}, {pipeline_mode = #tpu.pipeline_mode<synchronous>, transform_indices = @transform_3, window_bounds = array<i64: 32, 32>}, {pipeline_mode = #tpu.pipeline_mode<synchronous>, transform_indices = @transform_4, window_bounds = array<i64: 1, 32>}, {pipeline_mode = #tpu.pipeline_mode<synchronous>, transform_indices = @transform_5, window_bounds = array<i64: 1, 32>}, {transform_indices = @transform_6, window_bounds = array<i64: 8, 32>}, {transform_indices = @transform_7, window_bounds = array<i64: 8, 8>}]} {
    %c0 = arith.constant 0 : index
    %c0_0 = arith.constant 0 : index
    %c0_1 = arith.constant 0 : index
    %0 = vector.load %arg2[%c0, %c0_0, %c0_1] : memref<8x8x32xf32, #tpu.memory_space<vmem>>, vector<8x8x32xf32>
    %1 = vector.shape_cast %0 : vector<8x8x32xf32> to vector<64x32xf32>
    %c0_2 = arith.constant 0 : index
    %c0_3 = arith.constant 0 : index
    %2 = vector.load %arg3[%c0_2, %c0_3] : memref<32x32xf32, #tpu.memory_space<vmem>>, vector<32x32xf32>
    %cst = arith.constant dense<0.000000e+00> : vector<64x32xf32>
    %3 = tpu.matmul %1, %2, %cst {dimension_numbers = #tpu.dot_dimension_numbers<[1], [0], [0], [1], [0, 0, 1, 1], [], []>, precision = #tpu.contract_precision<fp32>} : vector<64x32xf32>, vector<32x32xf32>, vector<64x32xf32> -> vector<64x32xf32>
    %c0_4 = arith.constant 0 : index
    %c0_5 = arith.constant 0 : index
    %4 = vector.load %arg1[%c0_4, %c0_5] : memref<8x32xf32, #tpu.memory_space<vmem>>, vector<8x32xf32>
    %c0_6 = arith.constant 0 : index
    %c0_7 = arith.constant 0 : index
    %5 = vector.load %arg4[%c0_6, %c0_7] : memref<32x32xf32, #tpu.memory_space<vmem>>, vector<32x32xf32>
    %cst_8 = arith.constant dense<0.000000e+00> : vector<8x32xf32>
    %6 = tpu.matmul %4, %5, %cst_8 {dimension_numbers = #tpu.dot_dimension_numbers<[1], [0], [0], [1], [0, 0, 1, 1], [], []>, precision = #tpu.contract_precision<fp32>} : vector<8x32xf32>, vector<32x32xf32>, vector<8x32xf32> -> vector<8x32xf32>
    %c0_9 = arith.constant 0 : index
    %c0_10 = arith.constant 0 : index
    %7 = vector.load %arg5[%c0_9, %c0_10] : memref<1x32xf32, #tpu.memory_space<vmem>>, vector<1x32xf32>
    %8 = vector.broadcast %7 : vector<1x32xf32> to vector<8x32xf32>
    %9 = arith.addf %6, %8 : vector<8x32xf32>
    %10 = vector.shape_cast %3 : vector<64x32xf32> to vector<8x8x32xf32>
    %11 = vector.shape_cast %9 : vector<8x32xf32> to vector<8x1x32xf32>
    %12 = vector.broadcast %11 : vector<8x1x32xf32> to vector<8x8x32xf32>
    %13 = arith.addf %10, %12 : vector<8x8x32xf32>
    %14 = math.tanh %13 : vector<8x8x32xf32>
    %c0_11 = arith.constant 0 : index
    %c0_12 = arith.constant 0 : index
    %15 = vector.load %arg6[%c0_11, %c0_12] : memref<1x32xf32, #tpu.memory_space<vmem>>, vector<1x32xf32>
    %16 = vector.shape_cast %15 : vector<1x32xf32> to vector<1x1x32xf32>
    %17 = vector.broadcast %16 : vector<1x1x32xf32> to vector<8x8x32xf32>
    %18 = arith.mulf %14, %17 : vector<8x8x32xf32>
    %cst_13 = arith.constant dense<0.000000e+00> : vector<8x8xf32>
    %19 = vector.multi_reduction <add>, %18, %cst_13 [2] : vector<8x8x32xf32> to vector<8x8xf32>
    %cst_14 = arith.constant dense<0xFF800000> : vector<8xf32>
    %20 = vector.multi_reduction <maximumf>, %19, %cst_14 [1] : vector<8x8xf32> to vector<8xf32>
    %21 = vector.shape_cast %20 : vector<8xf32> to vector<8x1xf32>
    %22 = vector.broadcast %21 : vector<8x1xf32> to vector<8x8xf32>
    %23 = arith.subf %19, %22 : vector<8x8xf32>
    %24 = math.exp %23 : vector<8x8xf32>
    %cst_15 = arith.constant dense<0.000000e+00> : vector<8xf32>
    %25 = vector.multi_reduction <add>, %24, %cst_15 [1] : vector<8x8xf32> to vector<8xf32>
    %26 = vector.shape_cast %25 : vector<8xf32> to vector<8x1xf32>
    %27 = vector.broadcast %26 : vector<8x1xf32> to vector<8x8xf32>
    %28 = arith.divf %24, %27 : vector<8x8xf32>
    %29 = vector.shape_cast %28 : vector<8x8xf32> to vector<8x8x1xf32>
    %30 = vector.broadcast %29 : vector<8x8x1xf32> to vector<8x8x32xf32>
    %31 = arith.mulf %30, %0 : vector<8x8x32xf32>
    %cst_16 = arith.constant dense<0.000000e+00> : vector<8x32xf32>
    %32 = vector.multi_reduction <add>, %31, %cst_16 [1] : vector<8x8x32xf32> to vector<8x32xf32>
    %c0_17 = arith.constant 0 : index
    %c0_18 = arith.constant 0 : index
    %33 = vector.load %arg7[%c0_17, %c0_18] : memref<8x32xf32, #tpu.memory_space<vmem>>, vector<8x32xf32>
    tpu.vector_store %arg7[%c0_17, %c0_18], %32 {strides = array<i32>} : memref<8x32xf32, #tpu.memory_space<vmem>>, vector<8x32xf32>,
    %c0_19 = arith.constant 0 : index
    %c0_20 = arith.constant 0 : index
    %34 = vector.load %arg8[%c0_19, %c0_20] : memref<8x8xf32, #tpu.memory_space<vmem>>, vector<8x8xf32>
    tpu.vector_store %arg8[%c0_19, %c0_20], %28 {strides = array<i32>} : memref<8x8xf32, #tpu.memory_space<vmem>>, vector<8x8xf32>,
    return
  }
  func.func @transform_0(%arg0: i32) -> (i32, i32) {
    %c0_i32 = arith.constant 0 : i32
    %c0_i32_0 = arith.constant 0 : i32
    return %arg0, %c0_i32 : i32, i32
  }
  func.func @transform_1(%arg0: i32) -> (i32, i32, i32) {
    %c0_i32 = arith.constant 0 : i32
    %c0_i32_0 = arith.constant 0 : i32
    %c0_i32_1 = arith.constant 0 : i32
    return %arg0, %c0_i32, %c0_i32_0 : i32, i32, i32
  }
  func.func @transform_2(%arg0: i32) -> (i32, i32) {
    %c0_i32 = arith.constant 0 : i32
    %c0_i32_0 = arith.constant 0 : i32
    %c0_i32_1 = arith.constant 0 : i32
    return %c0_i32, %c0_i32_0 : i32, i32
  }
  func.func @transform_3(%arg0: i32) -> (i32, i32) {
    %c0_i32 = arith.constant 0 : i32
    %c0_i32_0 = arith.constant 0 : i32
    %c0_i32_1 = arith.constant 0 : i32
    return %c0_i32, %c0_i32_0 : i32, i32
  }
  func.func @transform_4(%arg0: i32) -> (i32, i32) {
    %c0_i32 = arith.constant 0 : i32
    %c0_i32_0 = arith.constant 0 : i32
    %c0_i32_1 = arith.constant 0 : i32
    return %c0_i32, %c0_i32_0 : i32, i32
  }
  func.func @transform_5(%arg0: i32) -> (i32, i32) {
    %c0_i32 = arith.constant 0 : i32
    %c0_i32_0 = arith.constant 0 : i32
    %c0_i32_1 = arith.constant 0 : i32
    return %c0_i32, %c0_i32_0 : i32, i32
  }
  func.func @transform_6(%arg0: i32) -> (i32, i32) {
    %c0_i32 = arith.constant 0 : i32
    %c0_i32_0 = arith.constant 0 : i32
    return %arg0, %c0_i32 : i32, i32
  }
  func.func @transform_7(%arg0: i32) -> (i32, i32) {
    %c0_i32 = arith.constant 0 : i32
    %c0_i32_0 = arith.constant 0 : i32
    return %arg0, %c0_i32 : i32, i32
  }
}

</mosaic_0001>

<bundles_post_ra>
// kernel: tpu_custom_call.1
= control target key start
LH: loop header
LB: loop body
LE: loop exit
PB: predicated region body
PF: predicated region fallthrough
CT: control target
= control target key end

     0   :  { %s4029_s0 = inlined_call_operand.hbm [shape: f32[16,32], index: 0, kind: input, shape index: {}]   ;;  %s4030_s1 = inlined_call_operand.hbm [shape: f32[16,8,32], index: 1, kind: input, shape index: {}]   ;;  %s4031_s2 = inlined_call_operand.hbm [shape: f32[32,32], index: 2, kind: input, shape index: {}]   ;;  %s4032_s3 = inlined_call_operand.hbm [shape: f32[32,32], index: 3, kind: input, shape index: {}]   ;;  %s4033_s4 = inlined_call_operand.vmem [shape: f32[1,32], index: 4, kind: input, shape index: {}]   ;;  %s4034_s5 = inlined_call_operand.vmem [shape: f32[1,32], index: 5, kind: input, shape index: {}]   ;;  %s4035_s6 = inlined_call_operand.hbm [shape: f32[16,32], index: 6, kind: output, shape index: {0}]   ;;  %s4036_s7 = inlined_call_operand.vmem [shape: f32[16,8], index: 7, kind: output, shape index: {1}]  }
   0x1   :  { %4044 = sst [smem:[#allocation16_spill]] %s4029_s0 }
   0x2   :  { %4045 = sst [smem:[#allocation17_spill]] %s4031_s2 }
   0x3   :  { %4046 = sst [smem:[#allocation18_spill]] %s4032_s3 }
   0x4   :  { %13 = vsyncpa [#allocation3], 0 }
   0x5   :  { %15 = vsyncpa [#allocation3 + $0x1], 0 }
   0x6   :  { %16 = vsyncpa [#allocation6], 0 }
   0x7   :  { %18 = vsyncpa [#allocation6 + $0x1], 0 }
   0x8   :  { %19 = vsyncpa [#allocation9], 0 }
   0x9   :  { %20 = vsyncpa [#allocation4], 0 }
   0xa   :  { %22 = vsyncpa [#allocation4 + $0x1], 0  ;;  %s3248_s24 = smov 0   ;;  %s3250_s25 = smov 0  }
   0xb   :  { %s3252_s26 = smov 0   ;;  %s3254_s27 = smov 0  }
   0xc LB: > { %s3269_s28 = sadd.s32 4294967295, %s3194_s27   ;;  %s2420_s29 = sadd.s32 4294967294, %s3194_s27   ;;  %s3194_s27 = sphi %s3254_s27, %s4073_s27   ;;  %s3190_s26 = sphi %s3252_s26, %s4072_s26   ;;  %s3186_s25 = sphi %s3250_s25, %s4071_s25   ;;  %s3182_s24 = sphi %s3248_s24, %s4070_s24  }
   0xd   : > { %p48_p0 = scmp.ne.s32.totalorder %s3186_s25, %s3182_s24  ;;  %p4037_p1 = scmp.eq.s32.totalorder %s3269_s28, 0 }
   0xe   : > { %p188_p3 = scmp.eq.s32.totalorder %s2420_s29, 1  ;;  %p2421_p5 = scmp.ge.s32.totalorder %s3194_s27, 1 }
   0xf   : > { %p3278_p4 = por %p4037_p1, %p48_p0  ;;  %p221_p7 = scmp.lt.s32.totalorder %s3194_s27, 3 }
  0x10   : > { %p3283_p6 = por %p188_p3, %p48_p0  ;;  %s3196_s10 = smov [#allocation7]  }
  0x11   : > { %s4047_s30 = scalar_select %p3278_p4, 1, 0 }
  0x12   : > { %s4048_s8 = scalar_select %p3283_p6, 1, 0 }
  0x13   : > { %p3288_p8 = pnand %p2421_p5, %p221_p7  ;;  %s233_s11 = sshll.u32 %s3196_s10, 4  ;;  %s3292_s11 = int_to_ptr.vmem [resolvable:$true] %s233_s11 }
  0x14   : > { %s3197_s13 = smov [#allocation8]   ;;  %s4051_s2 = sld [smem:[#allocation17_spill]] }
  0x15   : > { %p2885_p9 = pneg %p3288_p8  ;;  %s246_s14 = sshll.u32 %s3197_s13, 4  ;;  %s3303_s14 = int_to_ptr.vmem [resolvable:$true] %s246_s14 }
  0x17   : > { %p3299_p11 = pnand %p2885_p9, %p4037_p1 }
  0x19   : > { %p3002_p13 = pneg %p3299_p11 }
  0x1a   : > { %s3000_s17 = scalar_lea.hbm %s4051_s2, 512 }
  0x1b   : > { %p3001_p12 = scmp.ne.s32.totalorder %s4051_s2, %s3000_s17  ;;  %p3007_p5 = scmp.lt.u32.totalorder %s3000_s17, %s4051_s2 }
  0x1d   : > { %p3003_p0 = pnand %p3002_p13, %p3001_p12 }
  0x1f   : > { %p3004_p3 = pneg %p3003_p0 }
  0x21   : > { %p3009_p7 = pnand %p3007_p5, %p3004_p3 }
  0x23   : > { %3012 = shalt.err (!%p3009_p7)
}
  0x24   : > { %s3013_s22 = scalar_lea.vmem %s3292_s11, 512  ;;  %p3021_p2 = scmp.lt.s32.totalorder %s3292_s11, %s3292_s11 }
  0x25   : > { %p3014_p9 = scmp.ne.s32.totalorder %s3292_s11, %s3013_s22  ;;  %p3022_p12 = scmp.lt.s32.totalorder %s3013_s22, %s3013_s22 }
  0x27   : > { %p3016_p10 = pnand %p3014_p9, %p3002_p13  ;;  %p3023_p0 = por %p3022_p12, %p3021_p2 }
  0x29   : > { %p3017_p1 = pneg %p3016_p10 }
  0x2b   : > { %p3024_p6 = pnand %p3023_p0, %p3017_p1 }
  0x2d   : > { %3027 = shalt.err (!%p3024_p6)
}
  0x2e   : > { %s4038_s23 = smov 128   ;;  %s4039_s29 = smov 8  }
  0x2f   : > { %2888 = dma.hbm_to_vmem [thread:$0]  (!%p3299_p11), %s4051_s2, 512, %s3292_s11, [#allocation6], %s4038_s23, %s4038_s23, %s4039_s29  }
  0x30   : > { %s4052_s3 = sld [smem:[#allocation18_spill]] }
  0x36   : > { %s3028_s17 = scalar_lea.hbm %s4052_s3, 512 }
  0x37   : > { %p3029_p1 = scmp.ne.s32.totalorder %s4052_s3, %s3028_s17  ;;  %p3035_p10 = scmp.lt.u32.totalorder %s3028_s17, %s4052_s3 }
  0x39   : > { %p3031_p2 = pnand %p3029_p1, %p3002_p13 }
  0x3b   : > { %p3032_p6 = pneg %p3031_p2 }
  0x3d   : > { %p3037_p3 = pnand %p3035_p10, %p3032_p6 }
  0x3f   : > { %3040 = shalt.err (!%p3037_p3)
}
  0x40   : > { %s3041_s11 = scalar_lea.vmem %s3303_s14, 512  ;;  %p3049_p12 = scmp.lt.s32.totalorder %s3303_s14, %s3303_s14 }
  0x41   : > { %p3042_p5 = scmp.ne.s32.totalorder %s3303_s14, %s3041_s11  ;;  %p3050_p0 = scmp.lt.s32.totalorder %s3041_s11, %s3041_s11 }
  0x43   : > { %p3044_p7 = pnand %p3042_p5, %p3002_p13  ;;  %p3051_p1 = por %p3050_p0, %p3049_p12 }
  0x45   : > { %p3045_p9 = pneg %p3044_p7 }
  0x47   : > { %p3052_p2 = pnand %p3051_p1, %p3045_p9 }
  0x49   : > { %3055 = shalt.err (!%p3052_p2)
}
  0x4a   : > { %2891 = dma.hbm_to_vmem [thread:$0]  (!%p3299_p11), %s4052_s3, 512, %s3303_s14, [#allocation9], %s4038_s23, %s4038_s23, %s4039_s29  }
  0x4b   : > { %s3364_s12 = sadd.s32 1, %s3194_s27   ;;  %s35_s13 = sadd.s32 1, %s3190_s26 }
  0x4c   : > { %s32_s15 = ssub.s32 %s3194_s27, %s3364_s12  ;;  %p42_p13 = scmp.ne.s32.totalorder %s3190_s26, %s3186_s25 }
  0x4d   : > { %p33_p6 = scmp.eq.s32.totalorder %s32_s15, 0  ;;  %p43_p10 = scmp.eq.s32.totalorder %s3194_s27, 0 }
  0x4e   : > { %p4053_p3 = scmp.eq.s32.totalorder %s3269_s28, 1  ;;  %p2905_p7 = scmp.lt.s32.totalorder %s3194_s27, 2 }
  0x4f   : > { %s3380_s17 = scalar_select %p33_p6, %s3190_s26, %s35_s13  }
  0x50   : > { %p3374_p5 = por %p4053_p3, %p42_p13  ;;  %p44_p9 = por %p43_p10, %p42_p13 }
  0x51   : > { %s3383_s18 = sand.u32 1, %s3190_s26   ;;  %s2426_s19 = sshll.u32 %s3194_s27, 7 }
  0x52   : > { %s4054_s16 = scalar_select %p3374_p5, 1, 0 }
  0x53   : > { %s2425_s14 = sshll.u32 %s3383_s18, 3  ;;  %s4055_s0 = sld [smem:[#allocation16_spill]] }
  0x54   : > { %s270_s22 = scalar_lea.vmem [#allocation2], %s2425_s14  ;;  %p3394_p11 = pnand %p2905_p7, %p44_p9 }
  0x55   : > { %s277_s10 = sshll.u32 %s270_s22, 4  ;;  %s2427_s15 = sshll.u32 %s3383_s18, 6  ;;  %s3392_s10 = int_to_ptr.vmem [resolvable:$true] %s277_s10 }
  0x56   : > { %s267_s29 = scalar_lea.sflag [#allocation3], %s3383_s18  ;;  %p3058_p0 = pneg %p3394_p11 }
  0x59   : > { %s3390_s11 = scalar_lea.hbm %s4055_s0, %s2426_s19  ;;  %s3061_s21 = scalar_lea.hbm %s4055_s0, 256 }
  0x5a   : > { %s3056_s20 = scalar_lea.hbm %s3390_s11, 128  ;;  %p3062_p13 = scmp.lt.u32.totalorder %s3390_s11, %s4055_s0 }
  0x5b   : > { %p3057_p12 = scmp.ne.s32.totalorder %s3390_s11, %s3056_s20  ;;  %p3063_p6 = scmp.lt.u32.totalorder %s3061_s21, %s3056_s20 }
  0x5c   : > { %p3065_p3 = scmp.lt.u32.totalorder %s3056_s20, %s3390_s11 }
  0x5d   : > { %p3059_p1 = pnand %p3058_p0, %p3057_p12  ;;  %p3064_p10 = por %p3063_p6, %p3062_p13 }
  0x5f   : > { %p3060_p2 = pneg %p3059_p1  ;;  %p3066_p7 = por %p3065_p3, %p3064_p10 }
  0x61   : > { %p3067_p9 = pnand %p3066_p7, %p3060_p2 }
  0x63   : > { %3070 = shalt.err (!%p3067_p9)
}
  0x64   : > { %s3071_s23 = scalar_lea.vmem %s3392_s10, 128  ;;  %s3200_s14 = smov [#allocation2]  }
  0x65   : > { %p3072_p12 = scmp.ne.s32.totalorder %s3392_s10, %s3071_s23  ;;  %s3076_s19 = sshll.u32 %s3200_s14, 4  ;;  %s3077_s19 = int_to_ptr.vmem [resolvable:$false] %s3076_s19 }
  0x66   : > { %s3078_s2 = scalar_lea.vmem %s3077_s19, 256  ;;  %p3079_p4 = scmp.lt.s32.totalorder %s3392_s10, %s3077_s19 }
  0x67   : > { %p3074_p1 = pnand %p3072_p12, %p3058_p0  ;;  %p3080_p13 = scmp.lt.s32.totalorder %s3078_s2, %s3071_s23 }
  0x69   : > { %p3075_p5 = pneg %p3074_p1  ;;  %p3081_p6 = por %p3080_p13, %p3079_p4 }
  0x6b   : > { %p3082_p10 = pnand %p3081_p6, %p3075_p5 }
  0x6d   : > { %3085 = shalt.err (!%p3082_p10)
}
  0x6e   : > { %2895 = dma.hbm_to_vmem [thread:$0]  (!%p3394_p11), %s3390_s11, 128, %s3392_s10, %s267_s29  }
  0x6f   : > { %s288_s20 = scalar_lea.vmem [#allocation5], %s2427_s15  ;;  %s2443_s22 = sshll.u32 %s3194_s27, 10 }
  0x70   : > { %s295_s21 = sshll.u32 %s288_s20, 4  ;;  %s3434_s19 = scalar_lea.hbm %s4030_s1, %s2443_s22  ;;  %s3428_s21 = int_to_ptr.vmem [resolvable:$true] %s295_s21 }
  0x71   : > { %s4057_s2 = sand.u32 1, %s3194_s27   ;;  %s3086_s3 = scalar_lea.hbm %s3434_s19, 1024 }
  0x72   : > { %s3438_s0 = scalar_lea.sflag [#allocation6], %s4057_s2  ;;  %p3087_p4 = scmp.ne.s32.totalorder %s3434_s19, %s3086_s3 }
  0x73   : > { %s3091_s11 = scalar_lea.hbm %s4030_s1, 2048  ;;  %p3092_p3 = scmp.lt.u32.totalorder %s3434_s19, %s4030_s1 }
  0x74   : > { %p3089_p5 = pnand %p3087_p4, %p3058_p0  ;;  %p3093_p7 = scmp.lt.u32.totalorder %s3091_s11, %s3086_s3 }
  0x75   : > { %p3095_p12 = scmp.lt.u32.totalorder %s3086_s3, %s3434_s19 }
  0x76   : > { %p3090_p2 = pneg %p3089_p5  ;;  %p3094_p9 = por %p3093_p7, %p3092_p3 }
  0x78   : > { %p3096_p1 = por %p3095_p12, %p3094_p9 }
  0x7a   : > { %p3097_p13 = pnand %p3096_p1, %p3090_p2 }
  0x7c   : > { %3100 = shalt.err (!%p3097_p13)
}
  0x7d   : > { %s3101_s20 = scalar_lea.vmem %s3428_s21, 1024  ;;  %s3201_s22 = smov [#allocation5]  }
  0x7e   : > { %p3102_p6 = scmp.ne.s32.totalorder %s3428_s21, %s3101_s20  ;;  %s3106_s14 = sshll.u32 %s3201_s22, 4  ;;  %s3107_s14 = int_to_ptr.vmem [resolvable:$false] %s3106_s14 }
  0x7f   : > { %s3108_s23 = scalar_lea.vmem %s3107_s14, 2048  ;;  %p3109_p5 = scmp.lt.s32.totalorder %s3428_s21, %s3107_s14 }
  0x80   : > { %p3104_p10 = pnand %p3102_p6, %p3058_p0  ;;  %p3110_p3 = scmp.lt.s32.totalorder %s3108_s23, %s3101_s20 }
  0x82   : > { %p3105_p4 = pneg %p3104_p10  ;;  %p3111_p7 = por %p3110_p3, %p3109_p5 }
  0x84   : > { %p3112_p9 = pnand %p3111_p7, %p3105_p4 }
  0x86   : > { %3115 = shalt.err (!%p3112_p9)
}
  0x87   : > { %s4058_s3 = smov 8   ;;  %s4059_s2 = smov 128  }
  0x88   : > { %2898 = dma.hbm_to_vmem [thread:$0]  (!%p3394_p11), %s3434_s19, 1024, %s3428_s21, %s3438_s0, %s4059_s2, %s4059_s2, %s4058_s3  }
  0x89   : > { %307 = sbr.rel (%p3288_p8) target bundleno = 1290 (0x50a), region = 44  ;;  %s3470_s29 = sand.u32 (!%p3288_p8), 1, %s3186_s25  }
  0x8a   : > { %s2431_s18 = sshll.u32 (!%p3288_p8), %s3470_s29, 3  ;;  %s310_s11 = scalar_lea.sflag (!%p3288_p8), [#allocation3], %s3470_s29 }
  0x8b   : > { %s3476_s13 = scalar_lea.vmem (!%p3288_p8), [#allocation2], %s2431_s18  ;;  %p4060_p0 = scmp.ne.s32.totalorder (!%p3288_p8), %s4047_s30, 0 }
  0x90   : > { %3161 = dma.done.wait (%p4060_p0), %s310_s11, 128  }
  0x91   : > { %3163 = vsyncadd (%p4060_p0), %s310_s11, 4294967168  ;;  %s318_s0 = sand.u32 1, %s3269_s28   ;;  %s2432_s9 = sshll.u32 %s3470_s29, 6 }
  0x92   : > { %s319_s21 = scalar_lea.sflag [#allocation6], %s318_s0  ;;  %s3484_s19 = scalar_lea.vmem [#allocation5], %s2432_s9 }
  0x93   : > { %3165 = dma.done.wait (%p4060_p0), %s319_s21, 1024  }
  0x94   : > { %3167 = vsyncadd (%p4060_p0), %s319_s21, 4294966272  ;;  %p4061_p8 = scmp.eq.s32.totalorder %s3269_s28, 0 }
  0x96   : > { %3169 = dma.done.wait (%p4061_p8), [#allocation6], 512   ;;  %p4062_p11 = pmov %p4061_p8 }
  0x97   : > { %p4063_p2 = pmov %p4061_p8 }
  0x98   : > { %3171 = vsyncadd (%p4062_p11), [#allocation6], 4294966784 }
  0x99   : > { %3173 = dma.done.wait (%p4063_p2), [#allocation9], 512   ;;  %p4064_p12 = pmov %p4063_p2 }
  0x9a   : > { %vm387_vm0 = vcmask 261120   ;;  %v383_v0 = vld [vmem:[#allocation7] sm:$0xff]  ;;  %v384_v1 = vld [vmem:[#allocation7 + $0x8] sm:$0xff]  ;;  %v385_v2 = vld [vmem:[#allocation7 + $0x10] sm:$0xff]  ;;  %vm3203_vm1 = vmmov 0   ;;  %vm1885_vm2 = vcmask 1041409  }
  0x9b   : > { %3175 = vsyncadd (%p4064_p12), [#allocation9], 4294966784  ;;  %v413_v3 = vand.u32 4294901760, %v383_v0  ;;  %v416_v4 = vand.u32 4294901760, %v384_v1  ;;  %v386_v5 = vld [vmem:[#allocation7 + $0x18] sm:$0xff]  ;;  %v419_v6 = vand.u32 4294901760, %v385_v2 }
  0x9c   : > { %v3499_v7 = vld [vmem:[%s3484_s19] sm:$0xff]  ;;  %v3502_v8 = vld [vmem:[%s3484_s19 + $0x8] sm:$0xff]  ;;  %v422_v9 = vand.u32 4294901760, %v386_v5  ;;  %v3509_v12 = vld [vmem:[%s3484_s19 + $0x10] sm:$0xff]  ;;  %vm1887_vm3 = vcmask 1042434   ;;  %vm1889_vm4 = vcmask 1043459  }
  0x9d   : > { %v389_v10 = vsel %vm387_vm0, %v3499_v7, 0  ;;  %v392_v11 = vsel %vm387_vm0, %v3502_v8, 0  ;;  %v3512_v13 = vld [vmem:[%s3484_s19 + $0x18] sm:$0xff]  ;;  %v3514_v14 = vpack.c.bf16 %v416_v4, %v413_v3  ;;  %v3520_v17 = vsub.f32 %v383_v0, %v413_v3  ;;  %v3567_v38 = vld [vmem:[%s3484_s19 + $0x20] sm:$0xff]  ;;  %v3585_v47 = vld [vmem:[%s3484_s19 + $0x28] sm:$0xff]  ;;  %p371_p1 = scmp.lt.s32.totalorder %s3269_s28, 1 }
  0x9e   : > { %v3516_v15 = vand.u32 4294901760, %v389_v10  ;;  %v3518_v16 = vand.u32 4294901760, %v392_v11  ;;  %v3522_v18 = vpack.c.bf16 %v422_v9, %v419_v6  ;;  %v3524_v19 = vsub.f32 %v384_v1, %v416_v4  ;;  %v3593_v52 = vld [vmem:[%s3484_s19 + $0x30] sm:$0xff]  ;;  %v3599_v57 = vld [vmem:[%s3484_s19 + $0x38] sm:$0xff]  ;;  %v3605_v61 = vld [vmem:[#allocation8] sm:$0xff]  ;;  %s2440_s11 = sshll.u32 %s3269_s28, 7 }
  0x9f   : > { %v395_v20 = vsel %vm387_vm0, %v3509_v12, 0  ;;  %v398_v21 = vsel %vm387_vm0, %v3512_v13, 0  ;;  %2733 = vmatprep.subr.bf16.mxu1 %v3514_v14  ;;  %v564_v24 = vand.u32 4294901760, %v3520_v17  ;;  %v3545_v28 = vsub.f32 %v385_v2, %v419_v6  ;;  %v1200_v2 = vld [vmem:[#allocation8 + $0x8] sm:$0xff]  ;;  %s3947_s22 = scalar_select %p371_p1, %s3269_s28, 1 }
  0xa0   : > { %v3532_v22 = vsub.f32 %v389_v10, %v3516_v15  ;;  %v3535_v23 = vsub.f32 %v392_v11, %v3518_v16  ;;  %v3538_v25 = vand.u32 4294901760, %v395_v20  ;;  %2574 = vmatprep.mubr.f32.mxu0 %v3516_v15  ;;  %2735 = vmatpush3.bf16.msra.mxu1 %v3514_v14  ;;  %v571_v26 = vand.u32 4294901760, %v3524_v19  ;;  %s3983_s19 = scalar_lea.hbm %s4035_s6, %s2440_s11  ;;  %s2264_s28 = scalar_lea.sflag [#allocation4], %s3470_s29 }
  0xa1   : > { %v3543_v27 = vand.u32 4294901760, %v398_v21  ;;  %v3547_v29 = vsub.f32 %v386_v5, %v422_v9  ;;  %2737 = vmatprep.subr.bf16.mxu1 %v3522_v18  ;;  %v565_v32 = vsub.f32 %v3520_v17, %v564_v24  ;;  %v578_v36 = vand.u32 4294901760, %v3545_v28  ;;  %s2436_s14 = sshll.u32 %s3947_s22, 3  ;;  %p4067_p6 = scmp.ne.s32.totalorder %s4054_s16, 0 }
  0xa2   : > { %v483_v30 = vand.u32 4294901760, %v3532_v22  ;;  %v493_v31 = vand.u32 4294901760, %v3535_v23  ;;  %v3556_v33 = vsub.f32 %v395_v20, %v3538_v25  ;;  %v572_v34 = vsub.f32 %v3524_v19, %v571_v26  ;;  %v1201_v20 = vld [vmem:[#allocation8 + $0x10] sm:$0xff]  ;;  %s374_s2 = scalar_lea.vmem %s4036_s7, %s2436_s14  ;;  %s3207_s30 = smov [#allocation10]  }
  0xa3   : > { %v3562_v35 = vsub.f32 %v398_v21, %v3543_v27  ;;  %v585_v37 = vand.u32 4294901760, %v3547_v29  ;;  %v566_v41 = vand.u32 4294901760, %v565_v32  ;;  %v579_v45 = vsub.f32 %v3545_v28, %v578_v36  ;;  %s3120_s10 = sshll.u32 %s3207_s30, 4  ;;  %s3121_s10 = int_to_ptr.vmem [resolvable:$false] %s3120_s10 }
  0xa4   : > { %v484_v39 = vsub.f32 %v3532_v22, %v483_v30  ;;  %v494_v40 = vsub.f32 %v3535_v23, %v493_v31  ;;  %v503_v42 = vand.u32 4294901760, %v3556_v33  ;;  %2739 = vmatpush3.bf16.msra.mxu1 %v3522_v18  ;;  %v573_v43 = vand.u32 4294901760, %v572_v34  ;;  %s3122_s15 = scalar_lea.vmem %s3121_s10, 256 }
  0xa5   : > { %v513_v44 = vand.u32 4294901760, %v3562_v35  ;;  %v586_v46 = vsub.f32 %v3547_v29, %v585_v37  ;;  %v401_v51 = vsel %vm387_vm0, %v3567_v38, 0  ;;  %v580_v55 = vand.u32 4294901760, %v579_v45 }
  0xa6   : > { %v485_v48 = vand.u32 4294901760, %v484_v39  ;;  %v495_v49 = vand.u32 4294901760, %v494_v40  ;;  %v504_v50 = vsub.f32 %v3556_v33, %v503_v42  ;;  %v2740_v53 = vpack.c.bf16 %v573_v43, %v566_v41  ;;  %v1202_v39 = vld [vmem:[#allocation8 + $0x18] sm:$0xff] }
  0xa7   : > { %v514_v54 = vsub.f32 %v3562_v35, %v513_v44  ;;  %v587_v56 = vand.u32 4294901760, %v586_v46  ;;  %v3601_v59 = vand.u32 4294901760, %v401_v51  ;;  %v404_v60 = vsel %vm387_vm0, %v3585_v47, 0  ;;  %v1198_v43 = vld [vmem:[%s3476_s13] sm:$0xff]  ;;  %s363_s13 = scalar_lea.vmem [#allocation10], %s2431_s18 }
  0xa8   : > { %2554 = vmatprep.mubr.f32.mxu1 %v485_v48  ;;  %v505_v58 = vand.u32 4294901760, %v504_v50  ;;  %2741 = vmatprep.subr.bf16.mxu0 %v2740_v53  ;;  %v3607_v0 = vand.u32 4294901760, %v404_v60  ;;  %v407_v1 = vsel %vm387_vm0, %v3593_v52, 0  ;;  %v410_v5 = vsel %vm387_vm0, %v3599_v57, 0  ;;  %s2281_s0 = sshll.u32 %s363_s13, 4  ;;  %s3985_s0 = int_to_ptr.vmem [resolvable:$true] %s2281_s0 }
  0xa9   : > { %2555 = vmatmul.mubr.f32.vlgmr.msra.gmra.mrb[0].mxu1 %v495_v49  ;;  %v515_v62 = vand.u32 4294901760, %v514_v54  ;;  %v2744_v63 = vpack.c.bf16 %v587_v56, %v580_v55  ;;  %2816 = vmatprep.subr.bf16.mxu1 %v2740_v53  ;;  %v3612_v3 = vsub.f32 %v401_v51, %v3601_v59  ;;  %v3614_v4 = vand.u32 4294901760, %v407_v1  ;;  %s3116_s18 = scalar_lea.vmem %s3985_s0, 128  ;;  %p3123_p5 = scmp.lt.s32.totalorder %s3985_s0, %s3121_s10 }
  0xaa   : > { %2743 = vmatpush3.bf16.msra.mxu0 %v2740_v53  ;;  %2818 = vmatpush3.bf16.msra.mxu1 %v2740_v53  ;;  %v3619_v6 = vsub.f32 %v404_v60, %v3607_v0  ;;  %v2748_v9 = vpack.c.bf16 %v3524_v19, %v3520_v17  ;;  %v3623_v10 = vand.u32 4294901760, %v410_v5  ;;  %v1214_v11 = vand.u32 4294901760, %v3605_v61  ;;  %p3117_p13 = scmp.ne.s32.totalorder %s3985_s0, %s3116_s18  ;;  %p3124_p3 = scmp.lt.s32.totalorder %s3122_s15, %s3116_s18 }
  0xab   : > { %2557 = vmatprep.mubr.f32.mxu1 %v505_v58  ;;  %2745 = vmatprep.subr.bf16.mxu0 %v2744_v63  ;;  %v523_v21 = vand.u32 4294901760, %v3612_v3  ;;  %v3628_v32 = vsub.f32 %v407_v1, %v3614_v4  ;;  %v1217_v34 = vand.u32 4294901760, %v1200_v2  ;;  %v2752_v48 = vpack.c.bf16 %v3547_v29, %v3545_v28 }
  0xac   : > { %2817 = vmatprep.subr.bf16.mxu1 %v2744_v63  ;;  %v533_v40 = vand.u32 4294901760, %v3619_v6  ;;  %v3632_v41 = vsub.f32 %v410_v5, %v3623_v10  ;;  %v1220_v49 = vand.u32 4294901760, %v1201_v20  ;;  %v3646_v53 = vsub.f32 %v3605_v61, %v1214_v11  ;;  %p3118_p10 = pnand %p3117_p13, %p4067_p6  ;;  %p3125_p7 = por %p3124_p3, %p3123_p5 }
  0xad   : > { %2558 = vmatmul.mubr.f32.gmra.mrb[2].mxu1 %v515_v62  ;;  %v524_v45 = vsub.f32 %v3612_v3, %v523_v21  ;;  %v4043_v46 = vand.u32 4294901760, %v3628_v32  ;;  %v1223_v54 = vand.u32 4294901760, %v1202_v39  ;;  %v3202_v58 = vmov 0.0|0.0  }
  0xae   : > { %2747 = vmatpush3.bf16.msra.mxu0 %v2744_v63  ;;  %v534_v50 = vsub.f32 %v3619_v6, %v533_v40  ;;  %2819 = vmatpush3.bf16.msra.mxu1 %v2744_v63  ;;  %v4042_v51 = vand.u32 4294901760, %v3632_v41  ;;  %v3652_v60 = vsub.f32 %v1200_v2, %v1217_v34  ;;  %v1211_v62 = vsel %vm387_vm0, %v1198_v43, 0  ;;  %p3119_p4 = pneg %p3118_p10 }
  0xaf   : > { %2749 = vmatprep.subr.bf16.mxu0 %v2748_v9  ;;  %v525_v55 = vand.u32 4294901760, %v524_v45  ;;  %v544_v56 = vsub.f32 %v3628_v32, %v4043_v46  ;;  %2780 = vmatprep.subr.bf16.mxu1 %v3202_v58  ;;  %v3659_v63 = vand.u32 4294901760, %v1211_v62  ;;  %v3665_v43 = vsub.f32 %v1201_v20, %v1220_v49 }
  0xb0   : > { %v535_v1 = vand.u32 4294901760, %v534_v50  ;;  %v554_v61 = vsub.f32 %v3632_v41, %v4042_v51  ;;  %v3667_v50 = vsub.f32 %v1202_v39, %v1223_v54  ;;  %v1295_v51 = vand.u32 4294901760, %v3646_v53  ;;  %p3126_p9 = pnand %p3125_p7, %p3119_p4 }
  0xb1   : > { %2575 = vmatmul.mubr.f32.vlgmr.msra.gmra.mrb[0].mxu0 %v3518_v16  ;;  %2560 = vmatprep.mubr.f32.mxu1 %v525_v55  ;;  %v545_v5 = vand.u32 4294901760, %v544_v56  ;;  %v3663_v2 = vsub.f32 %v1211_v62, %v3659_v63  ;;  %v1302_v46 = vand.u32 4294901760, %v3652_v60  ;;  %v2764_v62 = vpack.c.bf16 %v571_v26, %v564_v24 }
  0xb2   : > { %2751 = vmatpush3.bf16.msra.mxu0 %v2748_v9  ;;  %2561 = vmatmul.mubr.f32.gmra.mrb[4].mxu1 %v535_v1  ;;  %v555_v45 = vand.u32 4294901760, %v554_v61  ;;  %v3673_v9 = vpack.c.bf16 %v1217_v34, %v1214_v11  ;;  %v1296_v20 = vsub.f32 %v3646_v53, %v1295_v51  ;;  %v1316_v56 = vand.u32 4294901760, %v3667_v50 }
  0xb3   : > { %2577 = vmatprep.mubr.f32.mxu0 %v3538_v25  ;;  %2563 = vmatprep.mubr.f32.mxu1 %v545_v5  ;;  %v1284_v55 = vand.u32 4294901760, %v3663_v2  ;;  %v1303_v39 = vsub.f32 %v3652_v60, %v1302_v46  ;;  %v3690_v11 = vpack.c.bf16 %v1223_v54, %v1220_v49  ;;  %v3204_v19 = vmov 0.0  }
  0xb4   : > { %2753 = vmatprep.subr.bf16.mxu0 %v2752_v48  ;;  %v1297_v1 = vand.u32 4294901760, %v1296_v20  ;;  %v1317_v54 = vsub.f32 %v3667_v50, %v1316_v56  ;;  %v2768_v20 = vpack.c.bf16 %v585_v37, %v578_v36  ;;  %v4066_v28 = vand.u32 4294901760, %v3632_v41 }
  0xb5   : > { %2578 = vmatmul.mubr.f32.gmra.mrb[2].mxu0 %v3543_v27  ;;  %v1285_v34 = vsub.f32 %v3663_v2, %v1284_v55  ;;  %v1304_v61 = vand.u32 4294901760, %v1303_v39  ;;  %v2793_v39 = vpack.c.bf16 %v3652_v60, %v3646_v53  ;;  %v2805_v29 = vpack.c.bf16 %v1302_v46, %v1295_v51 }
  0xb6   : > { %2755 = vmatpush3.bf16.msra.mxu0 %v2752_v48  ;;  %2594 = vmatprep.mubr.f32.mxu0 %v3532_v22  ;;  %v1309_v48 = vand.u32 4294901760, %v3665_v43  ;;  %v1318_v5 = vand.u32 4294901760, %v1317_v54  ;;  %v2796_v22 = vpack.c.bf16 %v3667_v50, %v3665_v43  ;;  %v3205_v36 = vmov 1966171168  }
  0xb7   : > { %2564 = vmatmul.mubr.f32.gmra.mrb[6].mxu1 %v555_v45  ;;  %2757 = vmatprep.subr.bf16.mxu0 %v3514_v14  ;;  %v1286_v17 = vand.u32 4294901760, %v1285_v34  ;;  %v2787_v24 = vpack.c.bf16 %v1304_v61, %v1297_v1  ;;  %v1701_v37 = vunpack.c.l.s4 %v3205_v36  ;;  %vm1891_vm5 = vcmask 1044484  }
  0xb8   : > { %2580 = vmatprep.mubr.f32.mxu1 %v3601_v59  ;;  %v1310_v49 = vsub.f32 %v3665_v43, %v1309_v48  ;;  %vm1893_vm6 = vcmask 1045509   ;;  %vm1895_vm7 = vcmask 1046534   ;;  %vm1897_vm8 = vcmask 1047559  }
  0xb9   : > { %2595 = vmatmul.mubr.f32.vlgmr.msra.gmra.mrb[0].mxu0 %v3535_v23  ;;  %v4065_v23 = vand.u32 4294901760, %v3628_v32  ;;  %vm1900_vm9 = vcmask 64512  }
  0xba   : > { %2597 = vmatprep.mubr.f32.mxu0 %v3556_v33  ;;  %2759 = vmatpush3.bf16.msra.mxu0 %v3514_v14  ;;  %v1311_v26 = vand.u32 4294901760, %v1310_v49 }
  0xbb   : > { %2581 = vmatmul.mubr.f32.vlgmr.msra.gmra.mrb[4].mxu1 %v3607_v0  ;;  %2761 = vmatprep.subr.bf16.mxu0 %v3522_v18 }
  0xbc   : > { %2782 = vmatpush3.bf16.msra.mxu1 %v3673_v9  ;;  %2583 = vmatprep.mubr.f32.mxu1 %v3614_v4  ;;  %v2790_v45 = vpack.c.bf16 %v1318_v5, %v1311_v26 }
  0xbd   : > { %2598 = vmatmul.mubr.f32.gmra.mrb[2].mxu0 %v3562_v35  ;;  %2783 = vmatprep.subr.bf16.mxu1 %v3202_v58 }
  0xbe   : > { %2600 = vmatprep.mubr.f32.mxu0 %v3612_v3  ;;  %2763 = vmatpush3.bf16.msra.mxu0 %v3522_v18 }
  0xbf   : > { %2584 = vmatmul.mubr.f32.gmra.mrb[6].mxu1 %v3623_v10  ;;  %2765 = vmatprep.subr.bf16.mxu0 %v2764_v62 }
  0xc0   : > { %2785 = vmatpush3.bf16.msra.mxu1 %v3690_v11  ;;  %2674 = vmatprep.mubr.msk.f32.mxu1 %vm3203_vm1, %v3204_v19 }
  0xc1   : > { %2601 = vmatmul.mubr.f32.gmra.mrb[4].mxu0 %v3619_v6  ;;  %2786 = vmatprep.subr.bf16.mxu1 %v3202_v58 }
  0xc2   : > { %2603 = vmatprep.mubr.f32.mxu0 %v3628_v32 }
  0xc3   : > { %2675 = vmatmul.mubr.f32.vlgmr.msra.gmra.mrb[8].mxu1 %v1286_v17 }
  0xc4   : > { %2788 = vmatpush3.bf16.msra.mxu1 %v2787_v24  ;;  %2685 = vmatprep.mubr.msk.f32.mxu1 %vm3203_vm1, %v3204_v19 }
  0xc5   : > { %2604 = vmatmul.mubr.f32.gmra.mrb[6].mxu0 %v3632_v41  ;;  %2789 = vmatprep.subr.bf16.mxu1 %v3202_v58 }
  0xc6   : > { %2614 = vmatprep.mubr.f32.mxu0 %v483_v30  ;;  %v2808_v30 = vpack.c.bf16 %v1316_v56, %v1309_v48 }
  0xc8   : > { %2791 = vmatpush3.bf16.msra.mxu1 %v2790_v45 }
  0xc9   : > { %2615 = vmatmul.mubr.f32.vlgmr.msra.gmra.mrb[0].mxu0 %v493_v31  ;;  %2792 = vmatprep.subr.bf16.mxu1 %v3202_v58 }
  0xca   : > { %2617 = vmatprep.mubr.f32.mxu0 %v503_v42  ;;  %2767 = vmatpush3.bf16.msra.mxu0 %v2764_v62  ;;  %v1703_v42 = vlaneseq }
  0xcb   : > { %2686 = vmatmul.mubr.f32.vlgmr.msra.gmra.mrb[8].mxu1 %v3659_v63  ;;  %2769 = vmatprep.subr.bf16.mxu0 %v2768_v20 }
  0xcc   : > { %2794 = vmatpush3.bf16.msra.mxu1 %v2793_v39  ;;  %2696 = vmatprep.mubr.msk.f32.mxu1 %vm3203_vm1, %v3204_v19 }
  0xcd   : > { %2618 = vmatmul.mubr.f32.gmra.mrb[2].mxu0 %v513_v44  ;;  %2795 = vmatprep.subr.bf16.mxu1 %v3202_v58  ;;  %v3802_v44 = vshrl.u32 %v1703_v42, 7 }
  0xce   : > { %2620 = vmatprep.mubr.f32.mxu0 %v523_v21  ;;  %2771 = vmatpush3.bf16.msra.mxu0 %v2768_v20 }
  0xcf   : > { %2773 = vmatprep.subr.bf16.mxu0 %v3514_v14  ;;  %v3809_v53 = vsub.s32 0, %v3802_v44 }
  0xd0   : > { %2797 = vmatpush3.bf16.msra.mxu1 %v2796_v22 }
  0xd1   : > { %2621 = vmatmul.mubr.f32.gmra.mrb[4].mxu0 %v533_v40  ;;  %2798 = vmatprep.subr.bf16.mxu1 %v3202_v58 }
  0xd2   : > { %2623 = vmatprep.mubr.f32.mxu0 %v4065_v23 }
  0xd3   : > { %2697 = vmatmul.mubr.f32.vlgmr.msra.gmra.mrb[8].mxu1 %v3663_v2 }
  0xd4   : > { %2800 = vmatpush3.bf16.msra.mxu1 %v3673_v9  ;;  %2707 = vmatprep.mubr.msk.f32.mxu1 %vm3203_vm1, %v3204_v19 }
  0xd5   : > { %2624 = vmatmul.mubr.f32.gmra.mrb[6].mxu0 %v4066_v28  ;;  %2801 = vmatprep.subr.bf16.mxu1 %v3202_v58 }
  0xd6   : > { %2634 = vmatprep.mubr.f32.mxu0 %v3516_v15 }
  0xd8   : > { %2803 = vmatpush3.bf16.msra.mxu1 %v3690_v11 }
  0xd9   : > { %2635 = vmatmul.mubr.f32.vlgmr.msra.gmra.mrb[0].mxu0 %v3518_v16  ;;  %2804 = vmatprep.subr.bf16.mxu1 %v3202_v58 }
  0xda   : > { %2637 = vmatprep.mubr.f32.mxu0 %v3538_v25  ;;  %2775 = vmatpush3.bf16.msra.mxu0 %v3514_v14 }
  0xdb   : > { %2708 = vmatmul.mubr.f32.vlgmr.msra.gmra.mrb[8].mxu1 %v1284_v55  ;;  %2777 = vmatprep.subr.bf16.mxu0 %v3522_v18 }
  0xdc   : > { %2806 = vmatpush3.bf16.msra.mxu1 %v2805_v29  ;;  %2718 = vmatprep.mubr.msk.f32.mxu1 %vm3203_vm1, %v3204_v19 }
  0xdd   : > { %2638 = vmatmul.mubr.f32.gmra.mrb[2].mxu0 %v3543_v27  ;;  %2807 = vmatprep.subr.bf16.mxu1 %v3202_v58 }
  0xde   : > { %2640 = vmatprep.mubr.f32.mxu0 %v3601_v59  ;;  %2779 = vmatpush3.bf16.msra.mxu0 %v3522_v18 }
  0xe0   : > { %2809 = vmatpush3.bf16.msra.mxu1 %v2808_v30 }
  0xe1   : > { %2641 = vmatmul.mubr.f32.gmra.mrb[4].mxu0 %v3607_v0  ;;  %2810 = vmatprep.subr.bf16.mxu1 %v3202_v58 }
  0xe2   : > { %2643 = vmatprep.mubr.f32.mxu0 %v3614_v4 }
  0xe3   : > { %2719 = vmatmul.mubr.f32.vlgmr.msra.gmra.mrb[8].mxu1 %v3659_v63 }
  0xe4   : > { %2812 = vmatpush3.bf16.msra.mxu1 %v3673_v9  ;;  %2729 = vmatprep.mubr.msk.f32.mxu1 %vm3203_vm1, %v3204_v19 }
  0xe5   : > { %2644 = vmatmul.mubr.f32.gmra.mrb[6].mxu0 %v3623_v10  ;;  %2813 = vmatprep.subr.bf16.mxu1 %v3202_v58 }
  0xe6   : > { %2654 = vmatprep.mubr.f32.mxu0 %v3516_v15 }
  0xe8   : > { %2815 = vmatpush3.bf16.msra.mxu1 %v3690_v11 }
  0xe9   : > { %2655 = vmatmul.mubr.f32.vlgmr.msra.gmra.mrb[0].mxu0 %v3518_v16 }
  0xea   : > { %2657 = vmatprep.mubr.f32.mxu0 %v3538_v25 }
  0xeb   : > { %2730 = vmatmul.mubr.f32.vlgmr.msra.gmra.mrb[8].mxu1 %v3659_v63 }
  0xed   : > { %2658 = vmatmul.mubr.f32.gmra.mrb[2].mxu0 %v3543_v27  ;;  %v1702_v27 = vunpack.c.0.s8 %v1701_v37 }
  0xee   : > { %2660 = vmatprep.mubr.f32.mxu0 %v3601_v59 }
  0xf1   : > { %2661 = vmatmul.mubr.f32.gmra.mrb[4].mxu0 %v3607_v0  ;;  %v2437_v0 = vld [vmem:[%s4033_s4] ss:$0 sm:$0xff] }
  0xf2   : > { %2663 = vmatprep.mubr.f32.mxu0 %v3614_v4  ;;  %v1705_v4 = vsub.s32 %v1702_v27, %v3802_v44 }
  0xf5   : > { %2664 = vmatmul.mubr.f32.gmra.mrb[6].mxu0 %v3623_v10 }
 0x17c   : > { %v2556_v14 = vpop.f32.mrb[0].mxu1 }
 0x17d   : > { %v487_v15 = vpop.f32.mrb[1].mxu1 }
 0x180   : > { %v2559_v18 = vpop.f32.mrb[2].mxu1 }
 0x181   : > { %v507_v31 = vpop.f32.mrb[3].mxu1 }
 0x18e   : > { %v2582_v33 = vpop.f32.mrb[4].mxu1 }
 0x18f   : > { %v672_v16 = vpop.f32.mrb[5].mxu1 }
 0x192   : > { %v2585_v35 = vpop.f32.mrb[6].mxu1 }
 0x193   : > { %v684_v25 = vpop.f32.mrb[7].mxu1 }
 0x1bc   : > { %v2656_v59 = vpop.f32.mrb[0].mxu0 }
 0x1bd   : > { %v2820_v3 = vadd.f32 %v2656_v59, %v2556_v14  ;;  %v1152_v6 = vpop.f32.mrb[1].mxu0 }
 0x1be   : > { %v1694_v10 = vpop.f32.mrb[8].mxu1  ;;  %v2821_v21 = vadd.f32 %v1152_v6, %v487_v15 }
 0x1bf   : > { %v2828_v32 = vadd.f32 %v2437_v0, %v1694_v10  ;;  %v2731_v40 = vpop.f32.mrb[9].mxu1 }
 0x1c0   : > { %v2659_v41 = vpop.f32.mrb[2].mxu0 }
 0x1c1   : > { %v1699_v46 = vcombine.high %v2828_v32, %v2828_v32  ;;  %v1706_v51 = vrot.slane %v2828_v32, %v1705_v4  ;;  %v2822_v58 = vadd.f32 %v2659_v41, %v2559_v18  ;;  %v1164_v60 = vpop.f32.mrb[3].mxu0 }
 0x1c2   : > { %v2823_v63 = vadd.f32 %v1164_v60, %v507_v31 }
 0x1c3   : > { %v1713_v2 = vrot.slane %v1699_v46, %v1705_v4  ;;  %v1714_v43 = vcombine.high %v1706_v51, %v1706_v51  ;;  %v1722_v50 = vrot.slane %v1706_v51, %v1705_v4 }
 0x1c4   : > { %v2662_v9 = vpop.f32.mrb[4].mxu0 }
 0x1c5   : > { %v1715_v55 = vcombine.high %v1713_v2, %v1713_v2  ;;  %v1736_v48 = vrot.slane %v1714_v43, %v1705_v4  ;;  %v1751_v56 = vrot.slane %v1722_v50, %v3809_v53  ;;  %v1744_v11 = vcombine.high %v1722_v50, %v1722_v50  ;;  %v1176_v34 = vpop.f32.mrb[5].mxu0 }
 0x1c6   : > { %v2824_v62 = vadd.f32 %v2662_v9, %v2582_v33  ;;  %v2825_v1 = vadd.f32 %v1176_v34, %v672_v16  ;;  %v1729_v61 = vrot.slane %v1713_v2, %v1705_v4 }
 0x1c7   : > { %v1755_v49 = vrot.slane %v1736_v48, %v3809_v53  ;;  %v1788_v54 = vadd.f32 %v2821_v21, %v1751_v56  ;;  %v1746_v17 = vcombine.high %v1736_v48, %v1736_v48  ;;  %v1759_v19 = vrot.slane %v1744_v11, %v3809_v53 }
 0x1c8   : > { %v1743_v24 = vrot.slane %v1715_v55, %v1705_v4  ;;  %v1767_v26 = vrot.slane %v1729_v61, %v3809_v53  ;;  %v2665_v5 = vpop.f32.mrb[6].mxu0  ;;  %v1745_v45 = vcombine.high %v1729_v61, %v1729_v61  ;;  %v1852_v11 = vand.u32 127, %v1703_v42 }
 0x1c9   : > { %v1789_v20 = vadd.f32 %v2820_v3, %v1755_v49  ;;  %2952 = vtanh.f32 %v1788_v54  ;;  %v1763_v39 = vrot.slane %v1746_v17, %v3809_v53  ;;  %v1790_v22 = vadd.f32 %v2823_v63, %v1759_v19  ;;  %v1188_v23 = vpop.f32.mrb[7].mxu0 }
 0x1ca   : > { %v1771_v28 = vrot.slane %v1743_v24, %v3809_v53  ;;  %v1792_v29 = vadd.f32 %v2825_v1, %v1767_v26  ;;  %v2826_v30 = vadd.f32 %v2665_v5, %v2585_v35  ;;  %v1747_v14 = vcombine.high %v1743_v24, %v1743_v24  ;;  %v2438_v35 = vld [vmem:[%s4034_s5] ss:$0 sm:$0xff] }
 0x1cb   : > { %2954 = vtanh.f32 %v1789_v20  ;;  %v1791_v15 = vadd.f32 %v2822_v58, %v1763_v39  ;;  %v2827_v18 = vadd.f32 %v1188_v23, %v684_v25  ;;  %v1775_v31 = vrot.slane %v1745_v45, %v3809_v53 }
 0x1cc   : > { %2956 = vtanh.f32 %v1790_v22  ;;  %v1793_v33 = vadd.f32 %v2824_v62, %v1771_v28  ;;  %v1779_v16 = vrot.slane %v1747_v14, %v3809_v53  ;;  %v3832_v62 = vsub.s32 %v1852_v11, %v3802_v44 }
 0x1cd   : > { %2958 = vtanh.f32 %v1791_v15  ;;  %v1794_v36 = vadd.f32 %v2827_v18, %v1775_v31 }
 0x1ce   : > { %v1795_v37 = vadd.f32 %v2826_v30, %v1779_v16  ;;  %2960 = vtanh.f32 %v1792_v29  ;;  %v3206_v16 = vmov 0  }
 0x1cf   : > { %2962 = vtanh.f32 %v1793_v33  ;;  %2951 = vset.pattern.permute.xlu0 %v3206_v16  ;;  %2950 = vset.pattern.permute.xlu1 %v3206_v16 }
 0x1d0   : > { %2964 = vtanh.f32 %v1794_v36  ;;  %v1911_v36 = vsub.s32 1, %v3802_v44 }
 0x1d1   : > { %2966 = vtanh.f32 %v1795_v37  ;;  %v1915_v37 = vsub.s32 2, %v3802_v44 }
 0x1d3   : > { %v2953_v27 = vpop.eup %2952 }
 0x1d4   : > { %v1811_v59 = vmul.f32 %v2953_v27, %v2438_v35 }
 0x1d5   : > { %v2955_v25 = vpop.eup %2954 }
 0x1d6   : > { %v2957_v0 = vpop.eup %2956  ;;  %v1819_v3 = vsel %vm387_vm0, %v1811_v59, 0.0  ;;  %v1812_v4 = vmul.f32 %v2955_v25, %v2438_v35 }
 0x1d7   : > { %v2959_v6 = vpop.eup %2958  ;;  %1820 = vadd.xlane.f32.xlu0 %v1819_v3  ;;  %v1813_v10 = vmul.f32 %v2957_v0, %v2438_v35  ;;  %v1923_v3 = vsub.s32 4, %v3802_v44 }
 0x1d8   : > { %v2961_v21 = vpop.eup %2960  ;;  %v1814_v40 = vmul.f32 %v2959_v6, %v2438_v35  ;;  %v1822_v46 = vsel %vm387_vm0, %v1812_v4, 0.0 }
 0x1d9   : > { %v1825_v32 = vsel %vm387_vm0, %v1813_v10, 0.0  ;;  %v2963_v41 = vpop.eup %2962  ;;  %v1815_v51 = vmul.f32 %v2961_v21, %v2438_v35 }
 0x1da   : > { %1826 = vadd.xlane.f32.xlu1 %v1825_v32  ;;  %v2965_v58 = vpop.eup %2964  ;;  %v1828_v60 = vsel %vm387_vm0, %v1814_v40, 0.0  ;;  %v1816_v63 = vmul.f32 %v2963_v41, %v2438_v35  ;;  %v1927_v41 = vsub.s32 5, %v3802_v44 }
 0x1db   : > { %1823 = vadd.xlane.f32.xlu0 %v1822_v46  ;;  %v2967_v2 = vpop.eup %2966  ;;  %v1831_v43 = vsel %vm387_vm0, %v1815_v51, 0.0  ;;  %v1817_v50 = vmul.f32 %v2965_v58, %v2438_v35 }
 0x1dc   : > { %v1834_v9 = vsel %vm387_vm0, %v1816_v63, 0.0  ;;  %v1818_v55 = vmul.f32 %v2967_v2, %v2438_v35  ;;  %v1919_v35 = vsub.s32 3, %v3802_v44 }
 0x1dd   : > { %v1837_v48 = vsel %vm387_vm0, %v1817_v50, 0.0  ;;  %v1935_v50 = vsub.s32 7, %v3802_v44 }
 0x1de   : > { %1829 = vadd.xlane.f32.xlu1 %v1828_v60  ;;  %v1840_v56 = vsel %vm387_vm0, %v1818_v55, 0.0  ;;  %v1931_v60 = vsub.s32 6, %v3802_v44 }
 0x1df   : > { %1832 = vadd.xlane.f32.xlu0 %v1831_v43 }
 0x1e2   : > { %1835 = vadd.xlane.f32.xlu1 %v1834_v9 }
 0x1e3   : > { %1838 = vadd.xlane.f32.xlu0 %v1837_v48 }
 0x1e6   : > { %1841 = vadd.xlane.f32.xlu1 %v1840_v56 }
 0x264   : > { %v1821_v34 = vpop.xlane.xlu0 %1820 }
 0x265   : > { %v1856_v49 = vrot.slane %v1821_v34, %v3832_v62 }
 0x267   : > { %v1827_v1 = vpop.xlane.xlu1 %1826 }
 0x268   : > { %v1824_v61 = vpop.xlane.xlu0 %1823  ;;  %v1864_v17 = vrot.slane %v1827_v1, %v3832_v62 }
 0x269   : > { %v1860_v54 = vrot.slane %v1824_v61, %v3832_v62 }
 0x26b   : > { %v1886_v19 = vsel %vm1885_vm2, %v1860_v54, %v1856_v49  ;;  %v1830_v24 = vpop.xlane.xlu1 %1829 }
 0x26c   : > { %v1888_v42 = vsel %vm1887_vm3, %v1864_v17, %v1886_v19  ;;  %v1868_v26 = vrot.slane %v1830_v24, %v3832_v62  ;;  %v1833_v5 = vpop.xlane.xlu0 %1832 }
 0x26d   : > { %v1872_v45 = vrot.slane %v1833_v5, %v3832_v62 }
 0x26e   : > { %v1890_v20 = vsel %vm1889_vm4, %v1868_v26, %v1888_v42 }
 0x26f   : > { %v1892_v39 = vsel %vm1891_vm5, %v1872_v45, %v1890_v20  ;;  %v1836_v22 = vpop.xlane.xlu1 %1835 }
 0x270   : > { %v1876_v23 = vrot.slane %v1836_v22, %v3832_v62  ;;  %v1839_v28 = vpop.xlane.xlu0 %1838 }
 0x271   : > { %v1880_v29 = vrot.slane %v1839_v28, %v3832_v62 }
 0x272   : > { %v1894_v30 = vsel %vm1893_vm6, %v1876_v23, %v1892_v39 }
 0x273   : > { %v1842_v14 = vpop.xlane.xlu1 %1841  ;;  %v1896_v15 = vsel %vm1895_vm7, %v1880_v29, %v1894_v30 }
 0x274   : > { %v1884_v18 = vrot.slane %v1842_v14, %v3832_v62 }
 0x276   : > { %v1898_v31 = vsel %vm1897_vm8, %v1884_v18, %v1896_v15 }
 0x277   : > { %v1901_v33 = vsel %vm1900_vm9, %v1898_v31, -inf }
 0x278   : > { %1902 = vmax.xlane.f32.xlu0 %v1901_v33 }
 0x305   : > { %v1903_v27 = vpop.xlane.xlu0 %1902 }
 0x306   : > { %v1908_v59 = vrot.slane %v1903_v27, %v3809_v53  ;;  %v1912_v25 = vrot.slane %v1903_v27, %v1911_v36  ;;  %v1916_v0 = vrot.slane %v1903_v27, %v1915_v37  ;;  %v1920_v4 = vrot.slane %v1903_v27, %v1919_v35 }
 0x307   : > { %v1924_v46 = vrot.slane %v1903_v27, %v1923_v3  ;;  %v1928_v63 = vrot.slane %v1903_v27, %v1927_v41  ;;  %v1932_v9 = vrot.slane %v1903_v27, %v1931_v60 }
 0x308   : > { %v1945_v6 = vsub.f32 %v1821_v34, %v1908_v59  ;;  %v1946_v10 = vsub.f32 %v1824_v61, %v1912_v25  ;;  %v1947_v21 = vsub.f32 %v1827_v1, %v1916_v0  ;;  %v1948_v51 = vsub.f32 %v1830_v24, %v1920_v4 }
 0x309   : > { %v1949_v2 = vsub.f32 %v1833_v5, %v1924_v46  ;;  %v1950_v55 = vsub.f32 %v1836_v22, %v1928_v63  ;;  %v1936_v34 = vrot.slane %v1903_v27, %v1935_v50  ;;  %v1951_v1 = vsub.f32 %v1839_v28, %v1932_v9 }
 0x30a   : > { %v1953_v32 = vmul.f32 1.442695, %v1945_v6  ;;  %v1955_v40 = vmul.f32 1.442695, %v1946_v10  ;;  %v1957_v58 = vmul.f32 1.442695, %v1947_v21 }
 0x30b   : > { %v1959_v43 = vmul.f32 1.442695, %v1948_v51  ;;  %v1961_v48 = vmul.f32 1.442695, %v1949_v2  ;;  %v1963_v61 = vmul.f32 1.442695, %v1950_v55  ;;  %v1952_v54 = vsub.f32 %v1842_v14, %v1936_v34 }
 0x30c   : > { %2968 = vpow2.f32 %v1953_v32  ;;  %v1965_v17 = vmul.f32 1.442695, %v1951_v1 }
 0x30d   : > { %2970 = vpow2.f32 %v1955_v40  ;;  %v1967_v24 = vmul.f32 1.442695, %v1952_v54 }
 0x30e   : > { %2972 = vpow2.f32 %v1957_v58 }
 0x30f   : > { %2974 = vpow2.f32 %v1959_v43 }
 0x310   : > { %2976 = vpow2.f32 %v1961_v48 }
 0x311   : > { %2978 = vpow2.f32 %v1963_v61 }
 0x312   : > { %2980 = vpow2.f32 %v1965_v17 }
 0x313   : > { %2982 = vpow2.f32 %v1967_v24 }
 0x316   : > { %v2969_v56 = vpop.eup %2968 }
 0x317   : > { %v3870_v11 = vpop.eup %2970  ;;  %1978 = vperm.xlu1 %2950, %v2969_v56  }
 0x318   : > { %1981 = vperm.xlu0 %2951, %v3870_v11   ;;  %v3875_v49 = vpop.eup %2972 }
 0x319   : > { %v3878_v19 = vpop.eup %2974 }
 0x31a   : > { %v3881_v42 = vpop.eup %2976 }
 0x31b   : > { %1984 = vperm.xlu1 %2950, %v3875_v49   ;;  %v3884_v26 = vpop.eup %2978 }
 0x31c   : > { %v3887_v5 = vpop.eup %2980 }
 0x31d   : > { %v3890_v45 = vpop.eup %2982 }
 0x31f   : > { %1987 = vperm.xlu1 %2950, %v3878_v19  }
 0x323   : > { %1990 = vperm.xlu1 %2950, %v3881_v42  }
 0x327   : > { %1993 = vperm.xlu1 %2950, %v3884_v26  }
 0x32b   : > { %1996 = vperm.xlu1 %2950, %v3887_v5  }
 0x32f   : > { %1999 = vperm.xlu1 %2950, %v3890_v45  }
 0x396   : > { %v1979_v20 = vpop.permute.xlu1 %1978 }
 0x397   : > { %v1982_v28 = vpop.permute.xlu0 %1981  ;;  %v2004_v14 = vrot.slane %v1979_v20, %v3832_v62 }
 0x398   : > { %v2008_v30 = vrot.slane %v1982_v28, %v3832_v62 }
 0x39a   : > { %v1985_v39 = vpop.permute.xlu1 %1984  ;;  %v2033_v16 = vsel %vm1885_vm2, %v2008_v30, %v2004_v14 }
 0x39b   : > { %v2012_v15 = vrot.slane %v1985_v39, %v3832_v62 }
 0x39d   : > { %v2034_v59 = vsel %vm1887_vm3, %v2012_v15, %v2033_v16 }
 0x39e   : > { %v1988_v22 = vpop.permute.xlu1 %1987 }
 0x39f   : > { %v2016_v18 = vrot.slane %v1988_v22, %v3832_v62 }
 0x3a1   : > { %v2035_v0 = vsel %vm1889_vm4, %v2016_v18, %v2034_v59 }
 0x3a2   : > { %v1991_v23 = vpop.permute.xlu1 %1990 }
 0x3a3   : > { %v2020_v31 = vrot.slane %v1991_v23, %v3832_v62 }
 0x3a5   : > { %v2036_v4 = vsel %vm1891_vm5, %v2020_v31, %v2035_v0 }
 0x3a6   : > { %v1994_v29 = vpop.permute.xlu1 %1993 }
 0x3a7   : > { %v2024_v27 = vrot.slane %v1994_v29, %v3832_v62 }
 0x3a9   : > { %v2037_v10 = vsel %vm1893_vm6, %v2024_v27, %v2036_v4 }
 0x3aa   : > { %v1997_v33 = vpop.permute.xlu1 %1996 }
 0x3ab   : > { %v2028_v25 = vrot.slane %v1997_v33, %v3832_v62 }
 0x3ad   : > { %v2038_v32 = vsel %vm1895_vm7, %v2028_v25, %v2037_v10 }
 0x3ae   : > { %v2000_v6 = vpop.permute.xlu1 %1999 }
 0x3af   : > { %v2032_v21 = vrot.slane %v2000_v6, %v3832_v62 }
 0x3b1   : > { %v2039_v40 = vsel %vm1897_vm8, %v2032_v21, %v2038_v32 }
 0x3b2   : > { %v2041_v46 = vsel %vm1900_vm9, %v2039_v40, 0.0 }
 0x3b3   : > { %2042 = vadd.xlane.f32.xlu1 %v2041_v46 }
 0x440   : > { %v2043_v51 = vpop.xlane.xlu1 %2042 }
 0x441   : > { %v2048_v58 = vrot.slane %v2043_v51, %v3809_v53  ;;  %v2052_v63 = vrot.slane %v2043_v51, %v1911_v36  ;;  %v2056_v2 = vrot.slane %v2043_v51, %v1915_v37  ;;  %v2060_v43 = vrot.slane %v2043_v51, %v1919_v35 }
 0x442   : > { %v2064_v55 = vrot.slane %v2043_v51, %v1923_v3  ;;  %v2068_v53 = vrot.slane %v2043_v51, %v1927_v41  ;;  %v2072_v37 = vrot.slane %v2043_v51, %v1931_v60  ;;  %v2076_v3 = vrot.slane %v2043_v51, %v1935_v50 }
 0x443   : > { %2984 = vrcp.f32 %v2048_v58 }
 0x444   : > { %2986 = vrcp.f32 %v2052_v63 }
 0x445   : > { %2988 = vrcp.f32 %v2056_v2 }
 0x446   : > { %2990 = vrcp.f32 %v2060_v43 }
 0x447   : > { %2992 = vrcp.f32 %v2064_v55 }
 0x448   : > { %2994 = vrcp.f32 %v2068_v53 }
 0x449   : > { %2996 = vrcp.f32 %v2072_v37 }
 0x44a   : > { %2998 = vrcp.f32 %v2076_v3 }
 0x44d   : > { %v2985_v9 = vpop.eup %2984 }
 0x44e   : > { %v2086_v48 = vmul.f32 %v2985_v9, %v2969_v56  ;;  %v2987_v34 = vpop.eup %2986 }
 0x44f   : > { %v2088_v36 = vmul.f32 %v2987_v34, %v3870_v11  ;;  %v2989_v1 = vpop.eup %2988 }
 0x450   : > { %2103 = vperm.xlu0 %2951, %v2086_v48   ;;  %v2090_v35 = vmul.f32 %v2989_v1, %v3875_v49  ;;  %v2991_v61 = vpop.eup %2990 }
 0x451   : > { %v2092_v56 = vmul.f32 %v2991_v61, %v3878_v19  ;;  %v2993_v54 = vpop.eup %2992 }
 0x452   : > { %v2094_v41 = vmul.f32 %v2993_v54, %v3881_v42  ;;  %v2995_v11 = vpop.eup %2994 }
 0x453   : > { %v2096_v17 = vmul.f32 %v2995_v11, %v3884_v26  ;;  %v2997_v60 = vpop.eup %2996 }
 0x454   : > { %2108 = vperm.xlu0 %2951, %v2088_v36   ;;  %v2098_v49 = vmul.f32 %v2997_v60, %v3887_v5  ;;  %v2999_v24 = vpop.eup %2998 }
 0x455   : > { %v2100_v44 = vmul.f32 %v2999_v24, %v3890_v45 }
 0x458   : > { %2113 = vperm.xlu0 %2951, %v2090_v35  }
 0x45c   : > { %2118 = vperm.xlu0 %2951, %v2092_v56  }
 0x460   : > { %2123 = vperm.xlu0 %2951, %v2094_v41  }
 0x464   : > { %2128 = vperm.xlu0 %2951, %v2096_v17  }
 0x468   : > { %2133 = vperm.xlu0 %2951, %v2098_v49  }
 0x46c   : > { %2138 = vperm.xlu0 %2951, %v2100_v44  }
 0x4cf   : > { %v2104_v50 = vpop.permute.xlu0 %2103 }
 0x4d0   : > { %v2141_v39 = vmul.f32 %v2104_v50, %v3499_v7  ;;  %v2225_v4 = vrot.slane %v2104_v50, %v3832_v62 }
 0x4d2   : > { %v2149_v23 = vsel %vm387_vm0, %v2141_v39, 0.0 }
 0x4d3   : > { %v2109_v19 = vpop.permute.xlu0 %2108  ;;  %v2150_v30 = vrot.slane %v2149_v23, 4 }
 0x4d4   : > { %v2142_v20 = vmul.f32 %v2109_v19, %v3502_v8 }
 0x4d5   : > { %v2151_v31 = vadd.f32 %v2150_v30, %v2149_v23 }
 0x4d6   : > { %v2156_v26 = vsel %vm387_vm0, %v2142_v20, 0.0 }
 0x4d7   : > { %v2114_v42 = vpop.permute.xlu0 %2113  ;;  %v2157_v29 = vrot.slane %v2156_v26, 4 }
 0x4d8   : > { %v2143_v22 = vmul.f32 %v2114_v42, %v3509_v12  ;;  %v2233_v10 = vrot.slane %v2114_v42, %v3832_v62 }
 0x4d9   : > { %v2158_v12 = vadd.f32 %v2157_v29, %v2156_v26 }
 0x4da   : > { %v2163_v5 = vsel %vm387_vm0, %v2143_v22, 0.0 }
 0x4db   : > { %v2119_v28 = vpop.permute.xlu0 %2118  ;;  %v2164_v14 = vrot.slane %v2163_v5, 4  ;;  %v2159_v6 = vrot.slane %v2158_v12, 2 }
 0x4dc   : > { %v2144_v45 = vmul.f32 %v2119_v28, %v3512_v13  ;;  %v2229_v13 = vrot.slane %v2109_v19, %v3832_v62  ;;  %v2237_v40 = vrot.slane %v2119_v28, %v3832_v62 }
 0x4dd   : > { %v2165_v33 = vadd.f32 %v2164_v14, %v2163_v5  ;;  %v2160_v48 = vadd.f32 %v2159_v6, %v2158_v12 }
 0x4de   : > { %v2170_v8 = vsel %vm387_vm0, %v2144_v45, 0.0  ;;  %v2254_v2 = vsel %vm1885_vm2, %v2229_v13, %v2225_v4 }
 0x4df   : > { %v2171_v15 = vrot.slane %v2170_v8, 4  ;;  %v2124_v7 = vpop.permute.xlu0 %2123  ;;  %v2166_v32 = vrot.slane %v2165_v33, 2  ;;  %v2255_v34 = vsel %vm1887_vm3, %v2233_v10, %v2254_v2  ;;  %v2161_v24 = vrot.slane %v2160_v48, 1 }
 0x4e0   : > { %v2145_v18 = vmul.f32 %v2124_v7, %v3567_v38  ;;  %v2152_v38 = vrot.slane %v2151_v31, 2  ;;  %v2241_v58 = vrot.slane %v2124_v7, %v3832_v62  ;;  %v2256_v35 = vsel %vm1889_vm4, %v2237_v40, %v2255_v34 }
 0x4e1   : > { %v2172_v27 = vadd.f32 %v2171_v15, %v2170_v8  ;;  %v2167_v37 = vadd.f32 %v2166_v32, %v2165_v33 }
 0x4e2   : > { %v2177_v16 = vsel %vm387_vm0, %v2145_v18, 0.0  ;;  %v2153_v1 = vadd.f32 %v2152_v38, %v2151_v31  ;;  %v2257_v56 = vsel %vm1891_vm5, %v2241_v58, %v2256_v35 }
 0x4e3   : > { %v2178_v59 = vrot.slane %v2177_v16, 4  ;;  %v2129_v25 = vpop.permute.xlu0 %2128  ;;  %v2173_v51 = vrot.slane %v2172_v27, 2  ;;  %v2168_v20 = vrot.slane %v2167_v37, 1 }
 0x4e4   : > { %v2146_v0 = vmul.f32 %v2129_v25, %v3585_v47  ;;  %v2245_v9 = vrot.slane %v2129_v25, %v3832_v62  ;;  %v2154_v22 = vrot.slane %v2153_v1, 1 }
 0x4e5   : > { %v2179_v21 = vadd.f32 %v2178_v59, %v2177_v16  ;;  %v2174_v3 = vadd.f32 %v2173_v51, %v2172_v27  ;;  %v2169_v30 = vadd.f32 %v2168_v20, %v2167_v37 }
 0x4e6   : > { %v2184_v46 = vsel %vm387_vm0, %v2146_v0, 0.0  ;;  %v2258_v17 = vsel %vm1893_vm6, %v2245_v9, %v2257_v56  ;;  %v2155_v14 = vadd.f32 %v2154_v22, %v2153_v1 }
 0x4e7   : > { %v2185_v63 = vrot.slane %v2184_v46, 4  ;;  %v2134_v47 = vpop.permute.xlu0 %2133  ;;  %v2180_v43 = vrot.slane %v2179_v21, 2  ;;  %v2175_v26 = vrot.slane %v2174_v3, 1 }
 0x4e8   : > { %v2147_v55 = vmul.f32 %v2134_v47, %v3593_v52  ;;  %v2249_v36 = vrot.slane %v2134_v47, %v3832_v62 }
 0x4e9   : > { %v2186_v53 = vadd.f32 %v2185_v63, %v2184_v46  ;;  %v2181_v52 = vadd.f32 %v2180_v43, %v2179_v21  ;;  %v2176_v8 = vadd.f32 %v2175_v26, %v2174_v3 }
 0x4ea   : > { %v2191_v61 = vsel %vm387_vm0, %v2147_v55, 0.0  ;;  %v2259_v19 = vsel %vm1895_vm7, %v2249_v36, %v2258_v17 }
 0x4eb   : > { %v2187_v54 = vrot.slane %v2186_v53, 2  ;;  %v2192_v41 = vrot.slane %v2191_v61, 4  ;;  %v2139_v11 = vpop.permute.xlu0 %2138  ;;  %v2182_v28 = vrot.slane %v2181_v52, 1 }
 0x4ec   : > { %v2148_v60 = vmul.f32 %v2139_v11, %v3599_v57  ;;  %v2253_v49 = vrot.slane %v2139_v11, %v3832_v62  ;;  %v2162_v57 = vadd.f32 %v2161_v24, %v2160_v48 }
 0x4ed   : > { %v2188_v44 = vadd.f32 %v2187_v54, %v2186_v53  ;;  %v2193_v50 = vadd.f32 %v2192_v41, %v2191_v61  ;;  %v2183_v18 = vadd.f32 %v2182_v28, %v2181_v52 }
 0x4ee   : > { %v2198_v39 = vsel %vm387_vm0, %v2148_v60, 0.0  ;;  %v2260_v42 = vsel %vm1897_vm8, %v2253_v49, %v2259_v19  ;;  %v2213_v12 = vsel %vm1885_vm2, %v2162_v57, %v2155_v14 }
 0x4ef   : > { %v2194_v23 = vrot.slane %v2193_v50, 2  ;;  %v2199_v5 = vrot.slane %v2198_v39, 4  ;;  %2262 = vst.msk [vmem:[%s374_s2] sm:$0xff] %vm1900_vm9, %v2260_v42  ;;  %v2189_v45 = vrot.slane %v2188_v44, 1  ;;  %v2214_v16 = vsel %vm1887_vm3, %v2169_v30, %v2213_v12 }
 0x4f0   : > { %v2215_v59 = vsel %vm1889_vm4, %v2176_v8, %v2214_v16 }
 0x4f1   : > { %v2195_v62 = vadd.f32 %v2194_v23, %v2193_v50  ;;  %v2200_v29 = vadd.f32 %v2199_v5, %v2198_v39  ;;  %v2190_v31 = vadd.f32 %v2189_v45, %v2188_v44  ;;  %v2216_v13 = vsel %vm1891_vm5, %v2183_v18, %v2215_v59 }
 0x4f3   : > { %v2196_v15 = vrot.slane %v2195_v62, 1  ;;  %v2201_v7 = vrot.slane %v2200_v29, 2  ;;  %v2217_v0 = vsel %vm1893_vm6, %v2190_v31, %v2216_v13 }
 0x4f5   : > { %v2202_v33 = vadd.f32 %v2201_v7, %v2200_v29  ;;  %v2197_v27 = vadd.f32 %v2196_v15, %v2195_v62 }
 0x4f7   : > { %v2203_v25 = vrot.slane %v2202_v33, 1  ;;  %v2218_v6 = vsel %vm1895_vm7, %v2197_v27, %v2217_v0 }
 0x4f9   : > { %v2204_v4 = vadd.f32 %v2203_v25, %v2202_v33 }
 0x4fb   : > { %v2219_v10 = vsel %vm1897_vm8, %v2204_v4, %v2218_v6 }
 0x4fc   : > { %2221 = vst.msk [vmem:[%s363_s13] sm:$0xff] %vm387_vm0, %v2219_v10 }
 0x4fd   : > { %3129 = shalt.err (!%p3126_p9)
}
 0x4fe   : > { %s3130_s29 = scalar_lea.hbm %s3983_s19, 128  ;;  %s3134_s14 = scalar_lea.hbm %s4035_s6, 256 }
 0x4ff   : > { %p3131_p0 = scmp.ne.s32.totalorder %s3983_s19, %s3130_s29  ;;  %p3135_p2 = scmp.lt.u32.totalorder %s3983_s19, %s4035_s6 }
 0x500   : > { %p3136_p12 = scmp.lt.u32.totalorder %s3134_s14, %s3130_s29  ;;  %p3138_p13 = scmp.lt.u32.totalorder %s3130_s29, %s3983_s19 }
 0x501   : > { %p3132_p8 = pnand %p3131_p0, %p4067_p6 }
 0x502   : > { %p3137_p1 = por %p3136_p12, %p3135_p2 }
 0x503   : > { %p3133_p11 = pneg %p3132_p8 }
 0x504   : > { %p3139_p10 = por %p3138_p13, %p3137_p1 }
 0x506   : > { %p3140_p4 = pnand %p3139_p10, %p3133_p11 }
 0x508   : > { %3143 = shalt.err (!%p3140_p4)
}
 0x509   : > { %2883 = dma.vmem_to_hbm [thread:$0]  (%p4067_p6), %s3985_s0, 128, %s3983_s19, %s2264_s28  }
 0x50a PF: > { %s2296_s2 = sand.u32 1, %s3182_s24   ;;  %p4068_p5 = scmp.ne.s32.totalorder %s4048_s8, 0 }
 0x50b   : > { %p4069_p3 = scmp.ge.s32.totalorder %s3194_s27, 2  ;;  %s2297_s11 = scalar_lea.sflag [#allocation4], %s2296_s2 }
 0x50d   : > { %p2900_p7 = pnand %p4069_p3, %p4068_p5 }
 0x50f   : > { %3177 = dma.done.wait (!%p2900_p7), %s2297_s11, 128  }
 0x510   : > { %3179 = vsyncadd (!%p2900_p7), %s2297_s11, 4294967168  ;;  %p25_p9 = scmp.ge.s32.totalorder %s3364_s12, 4   ;;  %s4070_s24 = smov %s3186_s25 }
 0x511   : > { %s4071_s25 = smov %s3190_s26  ;;  %s4072_s26 = smov %s3380_s17 }
 0x512   : > { %s4073_s27 = smov %s3364_s12  ;;  %27 = sbr.rel (!%p25_p9) target bundleno = 12 (0xc), region = 122 }
 0x519   :  { %2309 = vsyncpa [#allocation3], 1 }
 0x51a   :  { %2311 = vsyncpa [#allocation3 + $0x1], 1 }
 0x51b   :  { %2312 = vsyncpa [#allocation6], 1 }
 0x51c   :  { %2314 = vsyncpa [#allocation6 + $0x1], 1 }
 0x51d   :  { %2315 = vsyncpa [#allocation9], 1 }
 0x51e   :  { %2316 = vsyncpa [#allocation4], 1 }
 0x51f   :  { %2318 = vsyncpa [#allocation4 + $0x1], 1 }

</bundles_post_ra>
